<compile_context>
chip_gen: v7x
topology: tpu7x:2x2x1
jax: 0.10.0
libtpu: 0.0.40
codegen_flags: <defaults>
</compile_context>

<pallas_src>
import functools

import numpy as np
import jax
import jax.numpy as jnp
from jax.experimental import pallas as pl
from jax.experimental.pallas import tpu as pltpu


def _ldam_kernel(x_ref, tgt_ref, sm_ref, o_ref, *, s):
    """Per-row LDAM cross-entropy loss for one (TILE_N, C) tile of logits."""
    x = x_ref[...].astype(jnp.float32)        # [T, C]  (cast in-kernel, f32 math)
    tgt = tgt_ref[...]                        # [T, 1]  int32 labels
    sm = sm_ref[...]                          # [1, C]  f32, already scaled by s

    t, c = x.shape
    cls_ids = jax.lax.broadcasted_iota(jnp.int32, (t, c), 1)
    mask = cls_ids == tgt                     # [T, C] bool one-hot of target

    # z = s * where(mask, x - m, x)  ==  s*x - (s*m) only at the target column.
    z = s * x - jnp.where(mask, sm, 0.0)      # [T, C]

    # Numerically-stable cross entropy per row (3 lane reductions total).
    zmax = jnp.max(z, axis=1, keepdims=True)                               # [T, 1]
    lse = jnp.log(jnp.sum(jnp.exp(z - zmax), axis=1, keepdims=True)) + zmax
    z_t = jnp.sum(jnp.where(mask, z, 0.0), axis=1, keepdims=True)          # z[i, tgt[i]]

    o_ref[...] = lse - z_t                    # [T, 1] per-sample loss
    # NOTE: for very large C (>~8k) a second grid axis over C with an online
    # logsumexp accumulator would keep VMEM bounded; C here fits in one block.


def _choose_tile_n(n, c, itemsize):
    """Pick a batch tile: ~2 MiB per x buffer (double-buffered), multiple of 8."""
    budget = 2 * 1024 * 1024
    t = budget // max(1, c * itemsize)
    t = max(8, min(1024, (t // 8) * 8))
    n_pad8 = max(8, ((n + 7) // 8) * 8)
    return min(t, n_pad8)


def ldam_loss(x, target, m_list, s=30.0):
    """Pallas LDAM loss. x: [N, C] (f32/bf16), target: [N] int, m_list: [C] f32."""
    n, c = x.shape
    tile_n = _choose_tile_n(n, c, x.dtype.itemsize)
    n_pad = ((n + tile_n - 1) // tile_n) * tile_n
    grid = (n_pad // tile_n,)

    tgt = target.reshape(n, 1).astype(jnp.int32)
    # Fold the scale s into the margin row on the host (it is only [C]).
    sm = (jnp.float32(s) * m_list.astype(jnp.float32)).reshape(1, c)

    if n_pad != n:
        x = jnp.pad(x, ((0, n_pad - n), (0, 0)))
        tgt = jnp.pad(tgt, ((0, n_pad - n), (0, 0)))  # padded rows ignored below

    per_row = pl.pallas_call(
        functools.partial(_ldam_kernel, s=float(s)),
        out_shape=jax.ShapeDtypeStruct((n_pad, 1), jnp.float32),
        grid=grid,
        in_specs=[
            pl.BlockSpec((tile_n, c), lambda i: (i, 0)),   # logits tile (pipelined)
            pl.BlockSpec((tile_n, 1), lambda i: (i, 0)),   # labels tile
            pl.BlockSpec((1, c), lambda i: (0, 0)),        # scaled margins (resident)
        ],
        out_specs=pl.BlockSpec((tile_n, 1), lambda i: (i, 0)),
        compiler_params=pltpu.CompilerParams(
            dimension_semantics=("parallel",),             # megacore-shardable on v7x
            vmem_limit_bytes=32 * 1024 * 1024,
        ),
    )(x, tgt, sm)

    # Mean over the real (unpadded) rows — tiny reduction, done in XLA.
    return jnp.sum(per_row[:n, 0]) / jnp.float32(n)


def make_m_list(cls_num_list, max_m=0.5):
    """Deterministic margin list, same math as the PyTorch __init__."""
    cls_num = np.asarray(cls_num_list, dtype=np.float64)
    m_list = 1.0 / np.sqrt(np.sqrt(cls_num))
    m_list = m_list * (max_m / np.max(m_list))
    return jnp.asarray(m_list, dtype=jnp.float32)


if __name__ == "__main__":
    # Small, deterministic example: batch=8, num_classes=16.
    N, C = 8, 16
    cls_num_list = [int(v) for v in np.linspace(200, 10, C)]  # imbalanced counts
    m_list = make_m_list(cls_num_list, max_m=0.5)

    key = jax.random.PRNGKey(0)
    kx, kt = jax.random.split(key)
    x = jax.random.normal(kx, (N, C), dtype=jnp.float32)
    target = jax.random.randint(kt, (N,), 0, C, dtype=jnp.int32)

    loss = ldam_loss(x, target, m_list, s=30.0)
    jax.block_until_ready(loss)

    # Pure-JAX reference (same semantics as the PyTorch forward, weight=None).
    one_hot = jax.nn.one_hot(target, C, dtype=jnp.float32)
    batch_m = (one_hot * m_list[None, :]).sum(axis=1, keepdims=True)
    out = x - batch_m * one_hot
    z = 30.0 * out
    ref = jnp.mean(jax.nn.logsumexp(z, axis=1) - jnp.sum(z * one_hot, axis=1))
    assert jnp.allclose(loss, ref, rtol=1e-5, atol=1e-5), (loss, ref)

    print("KERNEL_OK")
</pallas_src>

<mosaic_0001>
module attributes {stable_mosaic.version = 11 : i64} {
  func.func @_ldam_kernel(%arg0: i32, %arg1: memref<8x16xf32, #tpu.memory_space<vmem>>, %arg2: memref<8x1xi32, #tpu.memory_space<vmem>>, %arg3: memref<1x16xf32, #tpu.memory_space<vmem>>, %arg4: memref<8x1xf32, #tpu.memory_space<vmem>>) attributes {dimension_semantics = [#tpu.dimension_semantics<parallel>], iteration_bounds = array<i64: 1>, scalar_prefetch = 0 : i64, scratch_operands = 0 : i64, tpu.core_type = #tpu.core_type<tc>, window_params = [{transform_indices = @transform_0, window_bounds = array<i64: 8, 16>}, {transform_indices = @transform_1, window_bounds = array<i64: 8, 1>}, {pipeline_mode = #tpu.pipeline_mode<synchronous>, transform_indices = @transform_2, window_bounds = array<i64: 1, 16>}, {transform_indices = @transform_3, window_bounds = array<i64: 8, 1>}]} {
    %c0 = arith.constant 0 : index
    %c0_0 = arith.constant 0 : index
    %0 = vector.load %arg1[%c0, %c0_0] : memref<8x16xf32, #tpu.memory_space<vmem>>, vector<8x16xf32>
    %c0_1 = arith.constant 0 : index
    %c0_2 = arith.constant 0 : index
    %1 = vector.load %arg2[%c0_1, %c0_2] : memref<8x1xi32, #tpu.memory_space<vmem>>, vector<8x1xi32>
    %c0_3 = arith.constant 0 : index
    %c0_4 = arith.constant 0 : index
    %2 = vector.load %arg3[%c0_3, %c0_4] : memref<1x16xf32, #tpu.memory_space<vmem>>, vector<1x16xf32>
    %3 = tpu.iota {dimensions = array<i32: 1>} : vector<8x16xi32>
    %4 = vector.broadcast %1 : vector<8x1xi32> to vector<8x16xi32>
    %5 = arith.cmpi eq, %3, %4 : vector<8x16xi32>
    %cst = arith.constant 3.000000e+01 : f32
    %6 = vector.broadcast %cst : f32 to vector<8x16xf32>
    %7 = arith.mulf %6, %0 : vector<8x16xf32>
    %cst_5 = arith.constant 0.000000e+00 : f32
    %8 = vector.shape_cast %2 : vector<1x16xf32> to vector<1x16xf32>
    %9 = vector.broadcast %8 : vector<1x16xf32> to vector<8x16xf32>
    %10 = vector.broadcast %cst_5 : f32 to vector<8x16xf32>
    %11 = arith.select %5, %9, %10 : vector<8x16xi1>, vector<8x16xf32>
    %12 = arith.subf %7, %11 : vector<8x16xf32>
    %cst_6 = arith.constant dense<0xFF800000> : vector<8xf32>
    %13 = vector.multi_reduction <maximumf>, %12, %cst_6 [1] : vector<8x16xf32> to vector<8xf32>
    %14 = vector.shape_cast %13 : vector<8xf32> to vector<8x1xf32>
    %15 = vector.broadcast %14 : vector<8x1xf32> to vector<8x16xf32>
    %16 = arith.subf %12, %15 : vector<8x16xf32>
    %17 = math.exp %16 : vector<8x16xf32>
    %cst_7 = arith.constant dense<0.000000e+00> : vector<8xf32>
    %18 = vector.multi_reduction <add>, %17, %cst_7 [1] : vector<8x16xf32> to vector<8xf32>
    %19 = vector.shape_cast %18 : vector<8xf32> to vector<8x1xf32>
    %20 = math.log %19 : vector<8x1xf32>
    %21 = arith.addf %20, %14 : vector<8x1xf32>
    %cst_8 = arith.constant 0.000000e+00 : f32
    %22 = vector.broadcast %cst_8 : f32 to vector<8x16xf32>
    %23 = arith.select %5, %12, %22 : vector<8x16xi1>, vector<8x16xf32>
    %cst_9 = arith.constant dense<0.000000e+00> : vector<8xf32>
    %24 = vector.multi_reduction <add>, %23, %cst_9 [1] : vector<8x16xf32> to vector<8xf32>
    %25 = vector.shape_cast %24 : vector<8xf32> to vector<8x1xf32>
    %26 = arith.subf %21, %25 : vector<8x1xf32>
    %c0_10 = arith.constant 0 : index
    %c0_11 = arith.constant 0 : index
    %27 = vector.load %arg4[%c0_10, %c0_11] : memref<8x1xf32, #tpu.memory_space<vmem>>, vector<8x1xf32>
    tpu.vector_store %arg4[%c0_10, %c0_11], %26 {strides = array<i32>} : memref<8x1xf32, #tpu.memory_space<vmem>>, vector<8x1xf32>,
    return
  }
  func.func @transform_0(%arg0: i32) -> (i32, i32) {
    %c0_i32 = arith.constant 0 : i32
    %c0_i32_0 = arith.constant 0 : i32
    return %arg0, %c0_i32 : i32, i32
  }
  func.func @transform_1(%arg0: i32) -> (i32, i32) {
    %c0_i32 = arith.constant 0 : i32
    %c0_i32_0 = arith.constant 0 : i32
    return %arg0, %c0_i32 : i32, i32
  }
  func.func @transform_2(%arg0: i32) -> (i32, i32) {
    %c0_i32 = arith.constant 0 : i32
    %c0_i32_0 = arith.constant 0 : i32
    %c0_i32_1 = arith.constant 0 : i32
    return %c0_i32, %c0_i32_0 : i32, i32
  }
  func.func @transform_3(%arg0: i32) -> (i32, i32) {
    %c0_i32 = arith.constant 0 : i32
    %c0_i32_0 = arith.constant 0 : i32
    return %arg0, %c0_i32 : i32, i32
  }
}

</mosaic_0001>

<bundles_post_ra>
// kernel: tpu_custom_call.1
= control target key start
LH: loop header
LB: loop body
LE: loop exit
PB: predicated region body
PF: predicated region fallthrough
CT: control target
= control target key end

     0   :  { %v63_v0 = vmov 0   ;;  %v17_v2 = vlaneseq  ;;  %vm32_vm1 = vcmask 130048   ;;  %vm50_vm2 = vcmask 7168   ;;  %s96_s1 = inlined_call_operand.vmem [shape: s32[8,1], index: 1, kind: input, shape index: {}]   ;;  %s97_s0 = inlined_call_operand.vmem [shape: f32[8,16], index: 0, kind: input, shape index: {}]   ;;  %s98_s2 = inlined_call_operand.vmem [shape: f32[1,16], index: 2, kind: input, shape index: {}]   ;;  %s99_s3 = inlined_call_operand.vmem [shape: f32[8,1], index: 3, kind: output, shape index: {}]  }
   0x1   :  { %58 = vset.pattern.permute.xlu0 %v63_v0  ;;  %v15_v1 = vld [vmem:[%s96_s1] sm:$0xff] }
   0x2   :  { %20 = vperm.xlu0 %58, %v15_v1   ;;  %v14_v3 = vld [vmem:[%s97_s0] sm:$0xff]  ;;  %v18_v4 = vand.u32 127, %v17_v2 }
   0x3   :  { %v56_v5 = vld [vmem:[%s98_s2] ss:$0 sm:$0xff]  ;;  %v23_v6 = vmul.f32 30.0, %v14_v3 }
  0x81   :  { %v21_v7 = vpop.permute.xlu0 %20 }
  0x82   :  { %vm22_vm0 = vcmp.eq.s32.totalorder %v18_v4, %v21_v7 }
  0x83   :  { %v30_v8 = vsel %vm22_vm0, %v56_v5, 0.0 }
  0x84   :  { %v31_v9 = vsub.f32 %v23_v6, %v30_v8 }
  0x86   :  { %v33_v10 = vsel %vm32_vm1, %v31_v9, -inf  ;;  %v45_v16 = vsel %vm22_vm0, %v31_v9, 0.0 }
  0x87   :  { %34 = vmax.xlane.f32.xlu0 %v33_v10  ;;  %v46_v17 = vsel %vm32_vm1, %v45_v16, 0.0 }
 0x114   :  { %v35_v11 = vpop.xlane.xlu0 %34 }
 0x115   :  { %v36_v12 = vsub.f32 %v31_v9, %v35_v11 }
 0x117   :  { %v37_v13 = vmul.f32 1.442695, %v36_v12 }
 0x119   :  { %59 = vpow2.f32 %v37_v13 }
 0x123   :  { %v60_v14 = vpop.eup %59 }
 0x124   :  { %v39_v15 = vsel %vm32_vm1, %v60_v14, 0.0 }
 0x125   :  { %40 = vadd.xlane.f32.xlu1 %v39_v15 }
 0x129   :  { %47 = vadd.xlane.f32.xlu1 %v46_v17 }
 0x1b2   :  { %v41_v18 = vpop.xlane.xlu1 %40 }
 0x1b3   :  { %61 = vlog2.f32 %v41_v18 }
 0x1b6   :  { %v48_v22 = vpop.xlane.xlu1 %47 }
 0x1bd   :  { %v62_v19 = vpop.eup %61 }
 0x1be   :  { %v43_v20 = vmul.f32 0.6931472, %v62_v19 }
 0x1c0   :  { %v44_v21 = vadd.f32 %v43_v20, %v35_v11 }
 0x1c2   :  { %v49_v23 = vsub.f32 %v44_v21, %v48_v22 }
 0x1c4   :  { %51 = vst.msk [vmem:[%s99_s3] sm:$0xff] %vm50_vm2, %v49_v23 }

</bundles_post_ra>
